<compile_context>
chip_gen: v7x
topology: tpu7x:2x2x1
jax: 0.10.0
libtpu: 0.0.40
codegen_flags: <defaults>
</compile_context>

<pallas_src>
import jax
import jax.numpy as jnp
from jax.experimental import pallas as pl
from jax.experimental.pallas import tpu as pltpu


def fczerolin_kernel(alphas_ref, x_ref, w_ref, b_ref, wout_ref, bout_ref, o_ref):
    """Refs (activations are transposed: lane axis == batch):
    alphas_ref : SMEM (deep,)             f32        ReZero gates
    x_ref      : VMEM (Dp, block_b)       f32|bf16   batch tile of h^T
    w_ref      : VMEM (deep, Dp, Dp)      f32|bf16   weight stack, torch (out, in)
    b_ref      : VMEM (deep, Dp, 1)       f32        bias stack (column vectors)
    wout_ref   : VMEM (Doutp, Dp)         f32|bf16   output weight, torch layout
    bout_ref   : VMEM (Doutp, 1)          f32        output bias (column vector)
    o_ref      : VMEM (Doutp, block_b)    f32        output tile (transposed)
    """
    deep = w_ref.shape[0]
    # Hoist the ReZero gate scalar loads off the per-layer dependency chain.
    alphas = [alphas_ref[d] for d in range(deep)]

    mm_dtype = w_ref.dtype
    h = x_ref[...].astype(jnp.float32)          # elementwise chain stays f32
    # `deep` is a small static int -> unrolled; each step is one MXU matmul in
    # its natural orientation: W[d] is (out, in), h is (in, batch).
    for d in range(deep):
        rhs = h if h.dtype == mm_dtype else h.astype(mm_dtype)
        z = jnp.dot(w_ref[d], rhs, preferred_element_type=jnp.float32) + b_ref[d]
        h = h + alphas[d] * jnp.maximum(z, 0.0)               # ReZero + ReLU

    rhs = h if h.dtype == wout_ref.dtype else h.astype(wout_ref.dtype)
    o_ref[...] = (
        jnp.dot(wout_ref[...], rhs, preferred_element_type=jnp.float32)
        + bout_ref[...]
    ).astype(o_ref.dtype)


def _round_up(x, m):
    return ((x + m - 1) // m) * m


def _cdiv(a, b):
    return -(-a // b)


def _num_tensorcores():
    """TensorCores reachable from one pallas_call via 'parallel' grid sharding."""
    try:
        kind = jax.devices()[0].device_kind.lower()
    except Exception:
        return 1
    if any(s in kind for s in ("v5 lite", "v5e", "v6 lite", "v6e", "v2", "v3")):
        return 1                        # single TensorCore per device
    if any(s in kind for s in ("v7", "v4", "v5p", "v5")):
        return 2                        # dual-TC / megacore parts
    return 1


def _batch_tiling(batch, max_block_b=1024):
    """One lane-dense batch tile per TensorCore; grid=(1,) on single-TC parts."""
    cores = _num_tensorcores()
    b128 = _round_up(batch, 128)                         # lane-dense batch axis
    n_tiles = cores if b128 >= 128 * cores else 1
    n_tiles = max(n_tiles, _cdiv(b128, max_block_b))     # keep tiles VMEM-modest
    bp = _round_up(batch, 128 * n_tiles)
    return n_tiles, bp, bp // n_tiles


def fczerolin_forward(x, alphas, weights, biases, w_out, b_out,
                      *, use_bf16_matmul=False):
    B, D = x.shape
    deep = weights.shape[0]
    Dout = w_out.shape[0]

    # ---- glue: sublane-pad feature dims, lane-pad (and tile) the batch ----
    Dp = _round_up(D, 8)
    Doutp = _round_up(Dout, 8)
    n_tiles, Bp, block_b = _batch_tiling(B)

    # Transposed, zero-padded activations: (Dp, Bp); lane axis carries batch.
    xt = jnp.pad(x.T, ((0, Dp - D), (0, Bp - B)))
    w_stack = jnp.pad(weights, ((0, 0), (0, Dp - D), (0, Dp - D)))
    b_stack = jnp.pad(biases, ((0, 0), (0, Dp - D))).reshape(deep, Dp, 1)
    wout_p = jnp.pad(w_out, ((0, Doutp - Dout), (0, Dp - D)))
    bout_p = jnp.pad(b_out, (0, Doutp - Dout)).reshape(Doutp, 1)

    if use_bf16_matmul:
        # bf16 DMA + MXU operands; f32 accumulation / elementwise inside kernel.
        xt = xt.astype(jnp.bfloat16)
        w_stack = w_stack.astype(jnp.bfloat16)
        wout_p = wout_p.astype(jnp.bfloat16)

    itemsize = 2 if use_bf16_matmul else 4
    flops = 2 * Bp * Dp * Dp * deep + 2 * Bp * Dp * Doutp
    bytes_accessed = (itemsize * (Dp * Bp + deep * Dp * Dp + Doutp * Dp)
                      + 4 * (deep * Dp + Doutp + Doutp * Bp))

    out_t = pl.pallas_call(
        fczerolin_kernel,
        out_shape=jax.ShapeDtypeStruct((Doutp, Bp), jnp.float32),
        grid=(n_tiles,),
        in_specs=[
            pl.BlockSpec(memory_space=pltpu.SMEM),                 # alphas
            pl.BlockSpec((Dp, block_b), lambda i: (0, i)),         # h^T tile
            pl.BlockSpec((deep, Dp, Dp), lambda i: (0, 0, 0)),     # W stack (invariant)
            pl.BlockSpec((deep, Dp, 1), lambda i: (0, 0, 0)),      # bias stack
            pl.BlockSpec((Doutp, Dp), lambda i: (0, 0)),           # W_out
            pl.BlockSpec((Doutp, 1), lambda i: (0, 0)),            # b_out
        ],
        out_specs=pl.BlockSpec((Doutp, block_b), lambda i: (0, i)),
        compiler_params=pltpu.CompilerParams(
            dimension_semantics=("parallel",)),
        cost_estimate=pl.CostEstimate(
            flops=flops, transcendentals=0, bytes_accessed=bytes_accessed),
    )(alphas, xt, w_stack, b_stack, wout_p, bout_p)

    return out_t[:Dout, :B].T


def _reference(x, alphas, weights, biases, w_out, b_out):
    h = x
    for d in range(weights.shape[0]):
        h = h + alphas[d] * jax.nn.relu(h @ weights[d].T + biases[d])
    return h @ w_out.T + b_out


if __name__ == "__main__":
    # Shapes implied by the module: in_dim=32, out_dim=16, deep=3.
    # Batch 256 -> one 256-row tile (v5e/v6e) or two 128-row tiles (v7x).
    B, IN_DIM, OUT_DIM, DEEP = 256, 32, 16, 3

    key = jax.random.PRNGKey(0)
    k_x, k_w, k_b, k_wo, k_bo, k_a = jax.random.split(key, 6)

    x = jax.random.normal(k_x, (B, IN_DIM), dtype=jnp.float32)

    # nn.Linear default init: U(-1/sqrt(fan_in), 1/sqrt(fan_in)), torch (out, in).
    bound_in = 1.0 / jnp.sqrt(jnp.float32(IN_DIM))
    weights = jax.random.uniform(
        k_w, (DEEP, IN_DIM, IN_DIM), minval=-bound_in, maxval=bound_in,
        dtype=jnp.float32)
    biases = jax.random.uniform(
        k_b, (DEEP, IN_DIM), minval=-bound_in, maxval=bound_in,
        dtype=jnp.float32)
    w_out = jax.random.uniform(
        k_wo, (OUT_DIM, IN_DIM), minval=-bound_in, maxval=bound_in,
        dtype=jnp.float32)
    b_out = jax.random.uniform(
        k_bo, (OUT_DIM,), minval=-bound_in, maxval=bound_in,
        dtype=jnp.float32)

    # FcZero.__init__ sets alphas = zeros; use nonzero gates here so the ReZero
    # residual path is actually exercised by the correctness check.
    alphas = jax.random.uniform(
        k_a, (DEEP,), minval=-0.5, maxval=0.5, dtype=jnp.float32)

    ref = _reference(x, alphas, weights, biases, w_out, b_out)

    # f32 path: matches the PyTorch module to tight tolerance.
    out = jax.block_until_ready(
        fczerolin_forward(x, alphas, weights, biases, w_out, b_out))
    assert out.shape == (B, OUT_DIM)
    assert jnp.allclose(out, ref, atol=1e-5, rtol=1e-5), "mismatch vs reference"

    # Zero-alpha (fresh-init) case: ReZero layers are identity.
    out0 = jax.block_until_ready(
        fczerolin_forward(x, jnp.zeros((DEEP,), jnp.float32),
                          weights, biases, w_out, b_out))
    ref0 = x @ w_out.T + b_out
    assert jnp.allclose(out0, ref0, atol=1e-5, rtol=1e-5), "zero-alpha mismatch"

    # bf16-operand path (v6e/v7x bandwidth optimization): looser tolerance.
    out_bf16 = jax.block_until_ready(
        fczerolin_forward(x, alphas, weights, biases, w_out, b_out,
                          use_bf16_matmul=True))
    assert jnp.allclose(out_bf16, ref, atol=5e-2, rtol=5e-2), "bf16 mismatch"

    print("KERNEL_OK")
</pallas_src>

<mosaic_0001>
module attributes {stable_mosaic.version = 11 : i64} {
  func.func @fczerolin_kernel(%arg0: i32, %arg1: memref<3xf32, #tpu.memory_space<smem>>, %arg2: memref<32x256xf32, #tpu.memory_space<vmem>>, %arg3: memref<3x32x32xf32, #tpu.memory_space<vmem>>, %arg4: memref<3x32x1xf32, #tpu.memory_space<vmem>>, %arg5: memref<16x32xf32, #tpu.memory_space<vmem>>, %arg6: memref<16x1xf32, #tpu.memory_space<vmem>>, %arg7: memref<16x256xf32, #tpu.memory_space<vmem>>) attributes {dimension_semantics = [#tpu.dimension_semantics<parallel>], iteration_bounds = array<i64: 1>, scalar_prefetch = 0 : i64, scratch_operands = 0 : i64, tpu.core_type = #tpu.core_type<tc>, window_params = [{transform_indices = @transform_0, window_bounds = array<i64: 3>}, {transform_indices = @transform_1, window_bounds = array<i64: 32, 256>}, {pipeline_mode = #tpu.pipeline_mode<synchronous>, transform_indices = @transform_2, window_bounds = array<i64: 3, 32, 32>}, {pipeline_mode = #tpu.pipeline_mode<synchronous>, transform_indices = @transform_3, window_bounds = array<i64: 3, 32, 1>}, {pipeline_mode = #tpu.pipeline_mode<synchronous>, transform_indices = @transform_4, window_bounds = array<i64: 16, 32>}, {pipeline_mode = #tpu.pipeline_mode<synchronous>, transform_indices = @transform_5, window_bounds = array<i64: 16, 1>}, {transform_indices = @transform_6, window_bounds = array<i64: 16, 256>}]} {
    %c0 = arith.constant 0 : index
    %0 = memref.load %arg1[%c0] : memref<3xf32, #tpu.memory_space<smem>>
    %c1 = arith.constant 1 : index
    %1 = memref.load %arg1[%c1] : memref<3xf32, #tpu.memory_space<smem>>
    %c2 = arith.constant 2 : index
    %2 = memref.load %arg1[%c2] : memref<3xf32, #tpu.memory_space<smem>>
    %c0_0 = arith.constant 0 : index
    %c0_1 = arith.constant 0 : index
    %3 = vector.load %arg2[%c0_0, %c0_1] : memref<32x256xf32, #tpu.memory_space<vmem>>, vector<32x256xf32>
    %c0_2 = arith.constant 0 : index
    %c0_3 = arith.constant 0 : index
    %c0_4 = arith.constant 0 : index
    %4 = vector.load %arg3[%c0_2, %c0_3, %c0_4] : memref<3x32x32xf32, #tpu.memory_space<vmem>>, vector<1x32x32xf32>
    %5 = vector.shape_cast %4 : vector<1x32x32xf32> to vector<32x32xf32>
    %cst = arith.constant dense<0.000000e+00> : vector<32x256xf32>
    %6 = tpu.matmul %5, %3, %cst {dimension_numbers = #tpu.dot_dimension_numbers<[1], [0], [0], [1], [0, 0, 1, 1], [], []>} : vector<32x32xf32>, vector<32x256xf32>, vector<32x256xf32> -> vector<32x256xf32>
    %c0_5 = arith.constant 0 : index
    %c0_6 = arith.constant 0 : index
    %c0_7 = arith.constant 0 : index
    %7 = vector.load %arg4[%c0_5, %c0_6, %c0_7] : memref<3x32x1xf32, #tpu.memory_space<vmem>>, vector<1x32x1xf32>
    %8 = vector.shape_cast %7 : vector<1x32x1xf32> to vector<32x1xf32>
    %9 = vector.broadcast %8 : vector<32x1xf32> to vector<32x256xf32>
    %10 = arith.addf %6, %9 : vector<32x256xf32>
    %cst_8 = arith.constant 0.000000e+00 : f32
    %11 = vector.broadcast %cst_8 : f32 to vector<32x256xf32>
    %12 = arith.maximumf %10, %11 : vector<32x256xf32>
    %13 = vector.broadcast %0 : f32 to vector<32x256xf32>
    %14 = arith.mulf %13, %12 : vector<32x256xf32>
    %15 = arith.addf %3, %14 : vector<32x256xf32>
    %c1_9 = arith.constant 1 : index
    %c0_10 = arith.constant 0 : index
    %c0_11 = arith.constant 0 : index
    %16 = vector.load %arg3[%c1_9, %c0_10, %c0_11] : memref<3x32x32xf32, #tpu.memory_space<vmem>>, vector<1x32x32xf32>
    %17 = vector.shape_cast %16 : vector<1x32x32xf32> to vector<32x32xf32>
    %cst_12 = arith.constant dense<0.000000e+00> : vector<32x256xf32>
    %18 = tpu.matmul %17, %15, %cst_12 {dimension_numbers = #tpu.dot_dimension_numbers<[1], [0], [0], [1], [0, 0, 1, 1], [], []>} : vector<32x32xf32>, vector<32x256xf32>, vector<32x256xf32> -> vector<32x256xf32>
    %c1_13 = arith.constant 1 : index
    %c0_14 = arith.constant 0 : index
    %c0_15 = arith.constant 0 : index
    %19 = vector.load %arg4[%c1_13, %c0_14, %c0_15] : memref<3x32x1xf32, #tpu.memory_space<vmem>>, vector<1x32x1xf32>
    %20 = vector.shape_cast %19 : vector<1x32x1xf32> to vector<32x1xf32>
    %21 = vector.broadcast %20 : vector<32x1xf32> to vector<32x256xf32>
    %22 = arith.addf %18, %21 : vector<32x256xf32>
    %cst_16 = arith.constant 0.000000e+00 : f32
    %23 = vector.broadcast %cst_16 : f32 to vector<32x256xf32>
    %24 = arith.maximumf %22, %23 : vector<32x256xf32>
    %25 = vector.broadcast %1 : f32 to vector<32x256xf32>
    %26 = arith.mulf %25, %24 : vector<32x256xf32>
    %27 = arith.addf %15, %26 : vector<32x256xf32>
    %c2_17 = arith.constant 2 : index
    %c0_18 = arith.constant 0 : index
    %c0_19 = arith.constant 0 : index
    %28 = vector.load %arg3[%c2_17, %c0_18, %c0_19] : memref<3x32x32xf32, #tpu.memory_space<vmem>>, vector<1x32x32xf32>
    %29 = vector.shape_cast %28 : vector<1x32x32xf32> to vector<32x32xf32>
    %cst_20 = arith.constant dense<0.000000e+00> : vector<32x256xf32>
    %30 = tpu.matmul %29, %27, %cst_20 {dimension_numbers = #tpu.dot_dimension_numbers<[1], [0], [0], [1], [0, 0, 1, 1], [], []>} : vector<32x32xf32>, vector<32x256xf32>, vector<32x256xf32> -> vector<32x256xf32>
    %c2_21 = arith.constant 2 : index
    %c0_22 = arith.constant 0 : index
    %c0_23 = arith.constant 0 : index
    %31 = vector.load %arg4[%c2_21, %c0_22, %c0_23] : memref<3x32x1xf32, #tpu.memory_space<vmem>>, vector<1x32x1xf32>
    %32 = vector.shape_cast %31 : vector<1x32x1xf32> to vector<32x1xf32>
    %33 = vector.broadcast %32 : vector<32x1xf32> to vector<32x256xf32>
    %34 = arith.addf %30, %33 : vector<32x256xf32>
    %cst_24 = arith.constant 0.000000e+00 : f32
    %35 = vector.broadcast %cst_24 : f32 to vector<32x256xf32>
    %36 = arith.maximumf %34, %35 : vector<32x256xf32>
    %37 = vector.broadcast %2 : f32 to vector<32x256xf32>
    %38 = arith.mulf %37, %36 : vector<32x256xf32>
    %39 = arith.addf %27, %38 : vector<32x256xf32>
    %c0_25 = arith.constant 0 : index
    %c0_26 = arith.constant 0 : index
    %40 = vector.load %arg5[%c0_25, %c0_26] : memref<16x32xf32, #tpu.memory_space<vmem>>, vector<16x32xf32>
    %cst_27 = arith.constant dense<0.000000e+00> : vector<16x256xf32>
    %41 = tpu.matmul %40, %39, %cst_27 {dimension_numbers = #tpu.dot_dimension_numbers<[1], [0], [0], [1], [0, 0, 1, 1], [], []>} : vector<16x32xf32>, vector<32x256xf32>, vector<16x256xf32> -> vector<16x256xf32>
    %c0_28 = arith.constant 0 : index
    %c0_29 = arith.constant 0 : index
    %42 = vector.load %arg6[%c0_28, %c0_29] : memref<16x1xf32, #tpu.memory_space<vmem>>, vector<16x1xf32>
    %43 = vector.broadcast %42 : vector<16x1xf32> to vector<16x256xf32>
    %44 = arith.addf %41, %43 : vector<16x256xf32>
    %c0_30 = arith.constant 0 : index
    %c0_31 = arith.constant 0 : index
    %45 = vector.load %arg7[%c0_30, %c0_31] : memref<16x256xf32, #tpu.memory_space<vmem>>, vector<16x256xf32>
    tpu.vector_store %arg7[%c0_30, %c0_31], %44 {strides = array<i32>} : memref<16x256xf32, #tpu.memory_space<vmem>>, vector<16x256xf32>,
    return
  }
  func.func @transform_0(%arg0: i32) -> i32 {
    %c0_i32 = arith.constant 0 : i32
    %c0_i32_0 = arith.constant 0 : i32
    return %c0_i32 : i32
  }
  func.func @transform_1(%arg0: i32) -> (i32, i32) {
    %c0_i32 = arith.constant 0 : i32
    %c0_i32_0 = arith.constant 0 : i32
    return %c0_i32, %arg0 : i32, i32
  }
  func.func @transform_2(%arg0: i32) -> (i32, i32, i32) {
    %c0_i32 = arith.constant 0 : i32
    %c0_i32_0 = arith.constant 0 : i32
    %c0_i32_1 = arith.constant 0 : i32
    %c0_i32_2 = arith.constant 0 : i32
    return %c0_i32, %c0_i32_0, %c0_i32_1 : i32, i32, i32
  }
  func.func @transform_3(%arg0: i32) -> (i32, i32, i32) {
    %c0_i32 = arith.constant 0 : i32
    %c0_i32_0 = arith.constant 0 : i32
    %c0_i32_1 = arith.constant 0 : i32
    %c0_i32_2 = arith.constant 0 : i32
    return %c0_i32, %c0_i32_0, %c0_i32_1 : i32, i32, i32
  }
  func.func @transform_4(%arg0: i32) -> (i32, i32) {
    %c0_i32 = arith.constant 0 : i32
    %c0_i32_0 = arith.constant 0 : i32
    %c0_i32_1 = arith.constant 0 : i32
    return %c0_i32, %c0_i32_0 : i32, i32
  }
  func.func @transform_5(%arg0: i32) -> (i32, i32) {
    %c0_i32 = arith.constant 0 : i32
    %c0_i32_0 = arith.constant 0 : i32
    %c0_i32_1 = arith.constant 0 : i32
    return %c0_i32, %c0_i32_0 : i32, i32
  }
  func.func @transform_6(%arg0: i32) -> (i32, i32) {
    %c0_i32 = arith.constant 0 : i32
    %c0_i32_0 = arith.constant 0 : i32
    return %c0_i32, %arg0 : i32, i32
  }
}

</mosaic_0001>

<bundles_post_ra>
// kernel: tpu_custom_call.1
= control target key start
LH: loop header
LB: loop body
LE: loop exit
PB: predicated region body
PF: predicated region fallthrough
CT: control target
= control target key end

     0   :  { %11 = vsyncpa [#allocation5], 0  ;;  %s1058_s0 = inlined_call_operand.vmem [shape: f32[3], index: 0, kind: input, shape index: {}]   ;;  %s1059_s1 = inlined_call_operand.hbm [shape: f32[32,256], index: 1, kind: input, shape index: {}]   ;;  %s1060_s2 = inlined_call_operand.vmem [shape: f32[3,32,32], index: 2, kind: input, shape index: {}]   ;;  %s1061_s3 = inlined_call_operand.vmem [shape: f32[3,32,1], index: 3, kind: input, shape index: {}]   ;;  %s1062_s4 = inlined_call_operand.vmem [shape: f32[16,32], index: 4, kind: input, shape index: {}]   ;;  %s1063_s5 = inlined_call_operand.vmem [shape: f32[16,1], index: 5, kind: input, shape index: {}]   ;;  %s1064_s6 = inlined_call_operand.hbm [shape: f32[16,256], index: 6, kind: output, shape index: {}]  }
   0x1   :  { %12 = vsyncpa [#allocation3], 0 }
   0x2   :  { %13 = vsyncpa [#allocation4], 0  ;;  %s20_s23 = sshll.u32 %s1058_s0, 4  ;;  %s21_s23 = int_to_ptr.vmem [resolvable:$true] %s20_s23 }
   0x3   :  { %s721_s24 = scalar_lea.vmem %s21_s23, 16  ;;  %p726_p1 = scmp.lt.s32.totalorder %s21_s23, %s21_s23 }
   0x4   :  { %p722_p0 = scmp.ne.s32.totalorder %s21_s23, %s721_s24  ;;  %p727_p2 = scmp.lt.s32.totalorder %s721_s24, %s721_s24 }
   0x6   :  { %p728_p3 = por %p727_p2, %p726_p1 }
   0x8   :  { %p729_p4 = pnand %p728_p3, %p722_p0 }
   0xa   :  { %732 = shalt.err (!%p729_p4)
}
   0xb   :  { %s783_s25 = smov [#allocation2]   ;;  %s784_s26 = smov [#allocation6]  }
   0xc   :  { %23 = dma.vmem_to_smem %s21_s23, 16, %s783_s25, [#allocation5]  }
   0xd   :  { %s29_s27 = sshll.u32 %s784_s26, 4  ;;  %s733_s30 = scalar_lea.hbm %s1059_s1, 1024  ;;  %s30_s27 = int_to_ptr.vmem [resolvable:$true] %s29_s27 }
   0xe   :  { %p734_p5 = scmp.ne.s32.totalorder %s1059_s1, %s733_s30  ;;  %p737_p6 = scmp.lt.u32.totalorder %s733_s30, %s1059_s1 }
  0x10   :  { %p739_p7 = pnand %p737_p6, %p734_p5 }
  0x12   :  { %742 = shalt.err (!%p739_p7)
}
  0x13   :  { %s743_s10 = scalar_lea.vmem %s30_s27, 1024  ;;  %p748_p9 = scmp.lt.s32.totalorder %s30_s27, %s30_s27 }
  0x14   :  { %p744_p8 = scmp.ne.s32.totalorder %s30_s27, %s743_s10  ;;  %p749_p10 = scmp.lt.s32.totalorder %s743_s10, %s743_s10 }
  0x16   :  { %p750_p11 = por %p749_p10, %p748_p9 }
  0x18   :  { %p751_p12 = pnand %p750_p11, %p744_p8 }
  0x1a   :  { %754 = shalt.err (!%p751_p12)
}
  0x1b   :  { %s785_s11 = smov 256   ;;  %s786_s12 = smov 16  }
  0x1c   :  { %35 = dma.hbm_to_vmem [thread:$0]  %s1059_s1, 1024, %s30_s27, [#allocation3], %s785_s11, %s785_s11, %s786_s12  }
  0x1d   :  { %777 = dma.done.wait [#allocation5], 16  }
  0x1e   :  { %778 = vsyncadd [#allocation5], 4294967280 }
  0x1f   :  { %779 = dma.done.wait [#allocation3], 1024  }
  0x20   :  { %780 = vsyncadd [#allocation3], 4294966272 }
  0x21   :  { %50 = sfence }
  0x22   :  { %v843_v0 = vld [vmem:[#allocation6 + $0x8] sm:$0xff]  ;;  %v845_v1 = vld [vmem:[#allocation6 + $0x18] sm:$0xff]  ;;  %v847_v2 = vld [vmem:[#allocation6] sm:$0xff]  ;;  %v787_v7 = vmov 0.0   ;;  %v788_v8 = vmov 0   ;;  %vm90_vm0 = vcmask 261120  }
  0x23   :  { %v680_v3 = vpack.c.bf16 %v845_v1, %v843_v0  ;;  %v851_v4 = vld [vmem:[#allocation6 + $0x10] sm:$0xff]  ;;  %v853_v5 = vld [vmem:[#allocation6 + $0x28] sm:$0xff]  ;;  %v855_v6 = vld [vmem:[#allocation6 + $0x38] sm:$0xff]  ;;  %167 = vmatprep.mubr.f32.mxu0 %v787_v7  ;;  %719 = vset.pattern.permute.xlu0 %v788_v8  ;;  %s51_s26 = sld [smem:[#allocation2]]  ;;  %s648_s0 = sld [smem:[#allocation2 + $0x1]] }
  0x24   :  { %v682_v9 = vpack.c.bf16 %v851_v4, %v847_v2  ;;  %v684_v10 = vpack.c.bf16 %v855_v6, %v853_v5  ;;  %v862_v11 = vld [vmem:[#allocation6 + $0x20] sm:$0xff]  ;;  %v864_v12 = vld [vmem:[#allocation6 + $0x30] sm:$0xff]  ;;  %720 = vset.pattern.permute.xlu1 %v788_v8  ;;  %323 = vmatprep.mubr.f32.mxu1 %v787_v7  ;;  %v67_v16 = vld [vmem:[%s1061_s3 + $0x8] sm:$0xff]  ;;  %s649_s18 = sld [smem:[#allocation2 + $0x2]]  ;;  %s789_s22 = smov [#allocation7]  }
  0x25   :  { %681 = vmatprep.subr.bf16.mxu0 %v680_v3  ;;  %v686_v13 = vpack.c.bf16 %v864_v12, %v862_v11  ;;  %v66_v14 = vld [vmem:[%s1061_s3] sm:$0xff]  ;;  %v68_v15 = vld [vmem:[%s1061_s3 + $0x10] sm:$0xff]  ;;  %v69_v17 = vld [vmem:[%s1061_s3 + $0x18] sm:$0xff]  ;;  %s635_s23 = sshll.u32 %s789_s22, 4  ;;  %s636_s23 = int_to_ptr.vmem [resolvable:$true] %s635_s23 }
  0x26   :  { %683 = vmatpush1.bf16.msra.mxu0 %v682_v9  ;;  %72 = vperm.xlu0 %719, %v66_v14   ;;  %v62_v18 = vld [vmem:[%s1060_s2] sm:$0xff]  ;;  %v659_v20 = vld [vmem:[%s1061_s3 + $0x28] sm:$0xff]  ;;  %v660_v22 = vld [vmem:[%s1061_s3 + $0x30] sm:$0xff]  ;;  %p760_p0 = scmp.lt.s32.totalorder %s636_s23, %s636_s23 }
  0x27   :  { %685 = vmatprep.subr.bf16.mxu0 %v684_v10  ;;  %82 = vperm.xlu1 %720, %v68_v15   ;;  %v658_v19 = vld [vmem:[%s1061_s3 + $0x20] sm:$0xff]  ;;  %v63_v21 = vld [vmem:[%s1060_s2 + $0x8] sm:$0xff]  ;;  %v661_v23 = vld [vmem:[%s1061_s3 + $0x38] sm:$0xff] }
  0x28   :  { %v64_v24 = vld [vmem:[%s1060_s2 + $0x10] sm:$0xff]  ;;  %v670_v25 = vld [vmem:[%s1061_s3 + $0x40] sm:$0xff]  ;;  %v671_v26 = vld [vmem:[%s1061_s3 + $0x48] sm:$0xff] }
  0x29   :  { %v65_v27 = vld [vmem:[%s1060_s2 + $0x18] sm:$0xff]  ;;  %v672_v28 = vld [vmem:[%s1061_s3 + $0x50] sm:$0xff]  ;;  %v531_v30 = vld [vmem:[%s1063_s5] sm:$0xff]  ;;  %v200_v41 = vstv %s51_s26 }
  0x2a   :  { %687 = vmatpush1.bf16.msra.mxu0 %v686_v13  ;;  %77 = vperm.xlu0 %719, %v67_v16   ;;  %v673_v29 = vld [vmem:[%s1061_s3 + $0x58] sm:$0xff]  ;;  %v532_v31 = vld [vmem:[%s1063_s5 + $0x8] sm:$0xff] }
  0x2b   :  { %87 = vperm.xlu1 %720, %v69_v17  }
  0x2d   :  { %650 = vmatmul.mubr.msk.f32.vlgmr.msra.gmra.mrb[0].mxu0 %vm90_vm0, %v62_v18 }
  0x2e   :  { %173 = vmatprep.mubr.f32.mxu0 %v787_v7  ;;  %229 = vperm.xlu0 %719, %v658_v19  }
  0x2f   :  { %234 = vperm.xlu1 %720, %v659_v20  }
  0x31   :  { %651 = vmatmul.mubr.msk.f32.gmra.mrb[2].mxu0 %vm90_vm0, %v63_v21 }
  0x32   :  { %179 = vmatprep.mubr.f32.mxu0 %v787_v7  ;;  %239 = vperm.xlu0 %719, %v660_v22  }
  0x33   :  { %244 = vperm.xlu1 %720, %v661_v23  }
  0x35   :  { %652 = vmatmul.mubr.msk.f32.gmra.mrb[4].mxu0 %vm90_vm0, %v64_v24 }
  0x36   :  { %185 = vmatprep.mubr.f32.mxu0 %v787_v7  ;;  %385 = vperm.xlu0 %719, %v670_v25  }
  0x37   :  { %390 = vperm.xlu1 %720, %v671_v26  }
  0x39   :  { %653 = vmatmul.mubr.msk.f32.gmra.mrb[6].mxu0 %vm90_vm0, %v65_v27 }
  0x3a   :  { %479 = vmatprep.mubr.f32.mxu0 %v787_v7  ;;  %395 = vperm.xlu0 %719, %v672_v28  }
  0x3b   :  { %400 = vperm.xlu1 %720, %v673_v29  }
  0x3e   :  { %535 = vperm.xlu0 %719, %v531_v30  }
  0x3f   :  { %540 = vperm.xlu1 %720, %v532_v31   ;;  %v356_v31 = vstv %s648_s0 }
  0xa5   :  { %v73_v32 = vpop.permute.xlu0 %72 }
  0xa6   :  { %v83_v44 = vpop.permute.xlu1 %82 }
  0xa9   :  { %v78_v37 = vpop.permute.xlu0 %77 }
  0xaa   :  { %v88_v57 = vpop.permute.xlu1 %87 }
  0xad   :  { %v230_v22 = vpop.permute.xlu0 %229 }
  0xae   :  { %v235_v27 = vpop.permute.xlu1 %234 }
 0x100   :  { %v169_v33 = vpop.f32.mrb[0].mxu0 }
 0x101   :  { %v170_v34 = vadd.f32 %v169_v33, %v73_v32  ;;  %v171_v35 = vpop.f32.mrb[1].mxu0 }
 0x102   :  { %v172_v36 = vadd.f32 %v171_v35, %v73_v32 }
 0x103   :  { %v192_v40 = vmax.f32 %v170_v34, 0.0 }
 0x104   :  { %v193_v38 = vmax.f32 %v172_v36, 0.0  ;;  %v175_v39 = vpop.f32.mrb[2].mxu0  ;;  %v240_v36 = vpop.permute.xlu0 %239 }
 0x105   :  { %v176_v42 = vadd.f32 %v175_v39, %v78_v37  ;;  %v177_v43 = vpop.f32.mrb[3].mxu0  ;;  %v201_v50 = vmul.f32 %v200_v41, %v192_v40 }
 0x106   :  { %v178_v45 = vadd.f32 %v177_v43, %v78_v37  ;;  %v202_v47 = vmul.f32 %v200_v41, %v193_v38 }
 0x107   :  { %v194_v46 = vmax.f32 %v176_v42, 0.0  ;;  %v941_v8 = vadd.f32 %v201_v50, %v847_v2 }
 0x108   :  { %v195_v48 = vmax.f32 %v178_v45, 0.0  ;;  %v181_v49 = vpop.f32.mrb[4].mxu0  ;;  %v935_v60 = vadd.f32 %v202_v47, %v843_v0  ;;  %v245_v47 = vpop.permute.xlu1 %244 }
 0x109   :  { %v203_v51 = vmul.f32 %v200_v41, %v194_v46  ;;  %v182_v52 = vadd.f32 %v181_v49, %v83_v44  ;;  %v183_v53 = vpop.f32.mrb[5].mxu0 }
 0x10a   :  { %v204_v54 = vmul.f32 %v200_v41, %v195_v48  ;;  %v184_v55 = vadd.f32 %v183_v53, %v83_v44 }
 0x10b   :  { %v932_v56 = vadd.f32 %v203_v51, %v851_v4  ;;  %v196_v62 = vmax.f32 %v182_v52, 0.0 }
 0x10c   :  { %v197_v58 = vmax.f32 %v184_v55, 0.0  ;;  %v187_v59 = vpop.f32.mrb[6].mxu0  ;;  %v938_v61 = vadd.f32 %v204_v54, %v845_v1 }
 0x10d   :  { %v188_v63 = vadd.f32 %v187_v59, %v88_v57  ;;  %v189_v3 = vpop.f32.mrb[7].mxu0  ;;  %v690_v13 = vpack.c.bf16 %v932_v56, %v941_v8  ;;  %v205_v15 = vmul.f32 %v200_v41, %v196_v62 }
 0x10e   :  { %v190_v9 = vadd.f32 %v189_v3, %v88_v57  ;;  %v688_v4 = vpack.c.bf16 %v938_v61, %v935_v60  ;;  %v206_v14 = vmul.f32 %v200_v41, %v197_v58 }
 0x10f   :  { %v198_v10 = vmax.f32 %v188_v63, 0.0  ;;  %v957_v19 = vadd.f32 %v205_v15, %v862_v11  ;;  %v657_v11 = vld [vmem:[%s1060_s2 + $0x38] sm:$0xff]  ;;  %v667_v15 = vld [vmem:[%s1060_s2 + $0x48] sm:$0xff] }
 0x110   :  { %v199_v0 = vmax.f32 %v190_v9, 0.0  ;;  %689 = vmatprep.subr.bf16.mxu1 %v688_v4  ;;  %v951_v2 = vadd.f32 %v206_v14, %v853_v5  ;;  %v655_v5 = vld [vmem:[%s1060_s2 + $0x28] sm:$0xff] }
 0x111   :  { %v207_v1 = vmul.f32 %v200_v41, %v198_v10  ;;  %691 = vmatpush1.bf16.msra.mxu1 %v690_v13 }
 0x112   :  { %v208_v16 = vmul.f32 %v200_v41, %v199_v0  ;;  %v666_v0 = vld [vmem:[%s1060_s2 + $0x40] sm:$0xff] }
 0x113   :  { %v948_v17 = vadd.f32 %v207_v1, %v864_v12  ;;  %v654_v12 = vld [vmem:[%s1060_s2 + $0x20] sm:$0xff]  ;;  %v668_v1 = vld [vmem:[%s1060_s2 + $0x50] sm:$0xff] }
 0x114   :  { %v954_v18 = vadd.f32 %v208_v16, %v855_v6  ;;  %v656_v6 = vld [vmem:[%s1060_s2 + $0x30] sm:$0xff]  ;;  %v669_v16 = vld [vmem:[%s1060_s2 + $0x58] sm:$0xff] }
 0x115   :  { %v694_v21 = vpack.c.bf16 %v948_v17, %v957_v19 }
 0x116   :  { %v692_v20 = vpack.c.bf16 %v954_v18, %v951_v2 }
 0x118   :  { %693 = vmatprep.subr.bf16.mxu1 %v692_v20 }
 0x119   :  { %695 = vmatpush1.bf16.msra.mxu1 %v694_v21 }
 0x11c   :  { %662 = vmatmul.mubr.msk.f32.vlgmr.msra.gmra.mrb[0].mxu1 %vm90_vm0, %v654_v12  ;;  %v391_v12 = vpop.permute.xlu1 %390 }
 0x11d   :  { %329 = vmatprep.mubr.f32.mxu1 %v787_v7 }
 0x120   :  { %663 = vmatmul.mubr.msk.f32.gmra.mrb[2].mxu1 %vm90_vm0, %v655_v5  ;;  %v512_v5 = vstv %s649_s18 }
 0x121   :  { %335 = vmatprep.mubr.f32.mxu1 %v787_v7 }
 0x124   :  { %664 = vmatmul.mubr.msk.f32.gmra.mrb[4].mxu1 %vm90_vm0, %v656_v6 }
 0x125   :  { %341 = vmatprep.mubr.f32.mxu1 %v787_v7 }
 0x128   :  { %665 = vmatmul.mubr.msk.f32.gmra.mrb[6].mxu1 %vm90_vm0, %v657_v11 }
 0x129   :  { %613 = vmatprep.mubr.f32.mxu1 %v787_v7 }
 0x1ef   :  { %v325_v23 = vpop.f32.mrb[0].mxu1 }
 0x1f0   :  { %v326_v24 = vadd.f32 %v325_v23, %v230_v22  ;;  %v327_v25 = vpop.f32.mrb[1].mxu1 }
 0x1f1   :  { %v328_v26 = vadd.f32 %v327_v25, %v230_v22 }
 0x1f2   :  { %v348_v30 = vmax.f32 %v326_v24, 0.0 }
 0x1f3   :  { %v349_v28 = vmax.f32 %v328_v26, 0.0  ;;  %v331_v29 = vpop.f32.mrb[2].mxu1 }
 0x1f4   :  { %v332_v32 = vadd.f32 %v331_v29, %v235_v27  ;;  %v333_v33 = vpop.f32.mrb[3].mxu1  ;;  %v357_v40 = vmul.f32 %v356_v31, %v348_v30 }
 0x1f5   :  { %v334_v34 = vadd.f32 %v333_v33, %v235_v27  ;;  %v358_v37 = vmul.f32 %v356_v31, %v349_v28 }
 0x1f6   :  { %v350_v35 = vmax.f32 %v332_v32, 0.0  ;;  %v365_v52 = vadd.f32 %v357_v40, %v941_v8 }
 0x1f7   :  { %v351_v38 = vmax.f32 %v334_v34, 0.0  ;;  %v337_v39 = vpop.f32.mrb[4].mxu1  ;;  %v987_v48 = vadd.f32 %v358_v37, %v935_v60 }
 0x1f8   :  { %v359_v41 = vmul.f32 %v356_v31, %v350_v35  ;;  %v338_v42 = vadd.f32 %v337_v39, %v240_v36  ;;  %v339_v43 = vpop.f32.mrb[5].mxu1  ;;  %v401_v39 = vpop.permute.xlu1 %400 }
 0x1f9   :  { %v360_v44 = vmul.f32 %v356_v31, %v351_v38  ;;  %v340_v45 = vadd.f32 %v339_v43, %v240_v36 }
 0x1fa   :  { %v984_v46 = vadd.f32 %v359_v41, %v932_v56  ;;  %v352_v53 = vmax.f32 %v338_v42, 0.0 }
 0x1fb   :  { %v990_v49 = vadd.f32 %v360_v44, %v938_v61  ;;  %v353_v50 = vmax.f32 %v340_v45, 0.0  ;;  %v343_v51 = vpop.f32.mrb[6].mxu1 }
 0x1fc   :  { %v344_v54 = vadd.f32 %v343_v51, %v245_v47  ;;  %v345_v55 = vpop.f32.mrb[7].mxu1  ;;  %v698_v56 = vpack.c.bf16 %v984_v46, %v365_v52  ;;  %v361_v63 = vmul.f32 %v356_v31, %v352_v53 }
 0x1fd   :  { %v346_v57 = vadd.f32 %v345_v55, %v245_v47  ;;  %v696_v58 = vpack.c.bf16 %v990_v49, %v987_v48  ;;  %v362_v62 = vmul.f32 %v356_v31, %v353_v50 }
 0x1fe   :  { %v354_v59 = vmax.f32 %v344_v54, 0.0  ;;  %v369_v10 = vadd.f32 %v361_v63, %v957_v19  ;;  %v530_v63 = vld [vmem:[%s1062_s4 + $0x8] sm:$0xff] }
 0x1ff   :  { %v355_v60 = vmax.f32 %v346_v57, 0.0  ;;  %697 = vmatprep.subr.bf16.mxu0 %v696_v58  ;;  %v1000_v8 = vadd.f32 %v362_v62, %v951_v2 }
 0x200   :  { %v363_v61 = vmul.f32 %v356_v31, %v354_v59  ;;  %699 = vmatpush1.bf16.msra.mxu0 %v698_v56 }
 0x201   :  { %v364_v3 = vmul.f32 %v356_v31, %v355_v60  ;;  %v529_v60 = vld [vmem:[%s1062_s4] sm:$0xff]  ;;  %s755_s4 = scalar_lea.vmem %s636_s23, 512 }
 0x202   :  { %v997_v9 = vadd.f32 %v363_v61, %v948_v17  ;;  %v386_v17 = vpop.permute.xlu0 %385  ;;  %p756_p13 = scmp.ne.s32.totalorder %s636_s23, %s755_s4  ;;  %p761_p1 = scmp.lt.s32.totalorder %s755_s4, %s755_s4 }
 0x203   :  { %v1003_v4 = vadd.f32 %v364_v3, %v954_v18 }
 0x204   :  { %v702_v14 = vpack.c.bf16 %v997_v9, %v369_v10  ;;  %p762_p2 = por %p761_p1, %p760_p0 }
 0x205   :  { %v700_v13 = vpack.c.bf16 %v1003_v4, %v1000_v8 }
 0x206   :  { %v396_v27 = vpop.permute.xlu0 %395  ;;  %p763_p3 = pnand %p762_p2, %p756_p13 }
 0x207   :  { %701 = vmatprep.subr.bf16.mxu0 %v700_v13 }
 0x208   :  { %703 = vmatpush1.bf16.msra.mxu0 %v702_v14 }
 0x20a   :  { %v536_v61 = vpop.permute.xlu0 %535 }
 0x20b   :  { %674 = vmatmul.mubr.msk.f32.vlgmr.msra.gmra.mrb[8].mxu0 %vm90_vm0, %v666_v0 }
 0x20c   :  { %485 = vmatprep.mubr.f32.mxu0 %v787_v7 }
 0x20f   :  { %675 = vmatmul.mubr.msk.f32.gmra.mrb[10].mxu0 %vm90_vm0, %v667_v15 }
 0x210   :  { %491 = vmatprep.mubr.f32.mxu0 %v787_v7 }
 0x213   :  { %676 = vmatmul.mubr.msk.f32.gmra.mrb[12].mxu0 %vm90_vm0, %v668_v1 }
 0x214   :  { %497 = vmatprep.mubr.f32.mxu0 %v787_v7 }
 0x217   :  { %677 = vmatmul.mubr.msk.f32.gmra.mrb[14].mxu0 %vm90_vm0, %v669_v16 }
 0x2de   :  { %v481_v2 = vpop.f32.mrb[8].mxu0 }
 0x2df   :  { %v482_v18 = vadd.f32 %v481_v2, %v386_v17  ;;  %v483_v19 = vpop.f32.mrb[9].mxu0 }
 0x2e0   :  { %v484_v20 = vadd.f32 %v483_v19, %v386_v17 }
 0x2e1   :  { %v504_v21 = vmax.f32 %v482_v18, 0.0 }
 0x2e2   :  { %v505_v6 = vmax.f32 %v484_v20, 0.0  ;;  %v487_v11 = vpop.f32.mrb[10].mxu0 }
 0x2e3   :  { %v488_v22 = vadd.f32 %v487_v11, %v391_v12  ;;  %v489_v23 = vpop.f32.mrb[11].mxu0  ;;  %v513_v25 = vmul.f32 %v512_v5, %v504_v21 }
 0x2e4   :  { %v490_v24 = vadd.f32 %v489_v23, %v391_v12  ;;  %v514_v28 = vmul.f32 %v512_v5, %v505_v6 }
 0x2e5   :  { %v506_v26 = vmax.f32 %v488_v22, 0.0  ;;  %v521_v36 = vadd.f32 %v513_v25, %v365_v52 }
 0x2e6   :  { %v507_v29 = vmax.f32 %v490_v24, 0.0  ;;  %v493_v30 = vpop.f32.mrb[12].mxu0  ;;  %v522_v40 = vadd.f32 %v514_v28, %v987_v48 }
 0x2e7   :  { %v515_v31 = vmul.f32 %v512_v5, %v506_v26  ;;  %v494_v32 = vadd.f32 %v493_v30, %v396_v27  ;;  %v495_v33 = vpop.f32.mrb[13].mxu0 }
 0x2e8   :  { %v516_v34 = vmul.f32 %v512_v5, %v507_v29  ;;  %v496_v35 = vadd.f32 %v495_v33, %v396_v27 }
 0x2e9   :  { %v523_v37 = vadd.f32 %v515_v31, %v984_v46  ;;  %v508_v38 = vmax.f32 %v494_v32, 0.0 }
 0x2ea   :  { %v524_v41 = vadd.f32 %v516_v34, %v990_v49  ;;  %v509_v42 = vmax.f32 %v496_v35, 0.0  ;;  %v499_v43 = vpop.f32.mrb[14].mxu0 }
 0x2eb   :  { %v706_v44 = vpack.c.bf16 %v523_v37, %v521_v36  ;;  %v500_v45 = vadd.f32 %v499_v43, %v401_v39  ;;  %v501_v47 = vpop.f32.mrb[15].mxu0  ;;  %v517_v53 = vmul.f32 %v512_v5, %v508_v38 }
 0x2ec   :  { %v502_v50 = vadd.f32 %v501_v47, %v401_v39  ;;  %v704_v51 = vpack.c.bf16 %v524_v41, %v522_v40  ;;  %v518_v55 = vmul.f32 %v512_v5, %v509_v42 }
 0x2ed   :  { %v510_v54 = vmax.f32 %v500_v45, 0.0  ;;  %v525_v58 = vadd.f32 %v517_v53, %v369_v10  ;;  %v541_v10 = vpop.permute.xlu1 %540 }
 0x2ee   :  { %v511_v57 = vmax.f32 %v502_v50, 0.0  ;;  %705 = vmatprep.subr.bf16.mxu1 %v704_v51  ;;  %v526_v49 = vadd.f32 %v518_v55, %v1000_v8 }
 0x2ef   :  { %v519_v52 = vmul.f32 %v512_v5, %v510_v54  ;;  %707 = vmatpush1.bf16.msra.mxu1 %v706_v44 }
 0x2f0   :  { %v520_v46 = vmul.f32 %v512_v5, %v511_v57 }
 0x2f1   :  { %v527_v48 = vadd.f32 %v519_v52, %v997_v9 }
 0x2f2   :  { %v528_v56 = vadd.f32 %v520_v46, %v1003_v4 }
 0x2f3   :  { %v710_v59 = vpack.c.bf16 %v527_v48, %v525_v58 }
 0x2f4   :  { %v708_v62 = vpack.c.bf16 %v528_v56, %v526_v49 }
 0x2f6   :  { %709 = vmatprep.subr.bf16.mxu1 %v708_v62 }
 0x2f7   :  { %711 = vmatpush1.bf16.msra.mxu1 %v710_v59 }
 0x2fa   :  { %678 = vmatmul.mubr.msk.f32.vlgmr.msra.gmra.mrb[8].mxu1 %vm90_vm0, %v529_v60 }
 0x2fb   :  { %619 = vmatprep.mubr.f32.mxu1 %v787_v7 }
 0x2fe   :  { %679 = vmatmul.mubr.msk.f32.gmra.mrb[10].mxu1 %vm90_vm0, %v530_v63 }
 0x3cd   :  { %v615_v3 = vpop.f32.mrb[8].mxu1 }
 0x3ce   :  { %v616_v9 = vadd.f32 %v615_v3, %v536_v61  ;;  %v617_v8 = vpop.f32.mrb[9].mxu1 }
 0x3cf   :  { %v618_v4 = vadd.f32 %v617_v8, %v536_v61 }
 0x3d0   :  { %626 = vst [vmem:[#allocation7] sm:$0xff] %v616_v9 }
 0x3d1   :  { %627 = vst [vmem:[#allocation7 + $0x8] sm:$0xff] %v618_v4  ;;  %v621_v13 = vpop.f32.mrb[10].mxu1 }
 0x3d2   :  { %v622_v14 = vadd.f32 %v621_v13, %v541_v10  ;;  %v623_v0 = vpop.f32.mrb[11].mxu1 }
 0x3d3   :  { %v624_v7 = vadd.f32 %v623_v0, %v541_v10 }
 0x3d4   :  { %628 = vst [vmem:[#allocation7 + $0x10] sm:$0xff] %v622_v14 }
 0x3d5   :  { %629 = vst [vmem:[#allocation7 + $0x18] sm:$0xff] %v624_v7 }
 0x3d6   :  { %766 = shalt.err (!%p763_p3)
}
 0x3d7   :  { %s767_s26 = scalar_lea.hbm %s1064_s6, 512 }
 0x3d8   :  { %p768_p4 = scmp.ne.s32.totalorder %s1064_s6, %s767_s26  ;;  %p771_p5 = scmp.lt.u32.totalorder %s767_s26, %s1064_s6 }
 0x3da   :  { %p773_p6 = pnand %p771_p5, %p768_p4 }
 0x3dc   :  { %776 = shalt.err (!%p773_p6)
}
 0x3dd   :  { %641 = dma.vmem_to_hbm [thread:$0]  %s636_s23, 512, %s1064_s6, [#allocation4], %s785_s11, %s785_s11, %s786_s12  }
 0x3de   :  { %781 = dma.done.wait [#allocation4], 512  }
 0x3df   :  { %782 = vsyncadd [#allocation4], 4294966784 }
 0x3e0   :  { %645 = vsyncpa [#allocation3], 1 }
 0x3e1   :  { %646 = vsyncpa [#allocation4], 1 }
 0x3e2   :  { %647 = vsyncpa [#allocation5], 1 }

</bundles_post_ra>
